<compile_context>
chip_gen: v7x
topology: tpu7x:2x2x1
jax: 0.10.0
libtpu: 0.0.40
codegen_flags: <defaults>
</compile_context>

<pallas_src>
import functools

import jax
import jax.numpy as jnp
from jax import lax
from jax.experimental import pallas as pl
from jax.experimental.pallas import tpu as pltpu


_LANE = 128
_VMEM_PIPE_BUDGET = 16 * 2**20     # target bytes for the double-buffered working set
_MAX_LANE_BLOCK = 4096             # lanes; amortizes the ~0.35 us/step grid overhead


def _convlstm_kernel(p_ref, w_ref, c_ref, h_out_ref, c_out_ref):
    """One lane-block (nblk columns of the flattened B*H*W axis) per grid step.

    p_ref    : (KKCp, nblk)  im2col patches of [x; h_cur]; row KKC is all-ones
    w_ref    : (4*Hd, KKCp)  conv weights as a matmul matrix; column KKC = bias
    c_ref    : (Hd, nblk)    current cell state (float32)
    h_out_ref: (Hd, nblk)    next hidden state (input dtype)
    c_out_ref: (Hd, nblk)    next cell state (float32, aliased onto c_ref's buffer)
    """
    Hd = c_ref.shape[0]

    # Whole conv (+ bias via the ones row) = one MXU matmul, f32 accumulation.
    cc = jnp.dot(w_ref[...], p_ref[...], preferred_element_type=jnp.float32)

    # Gate split = sublane row slices of the lane-dense (4*Hd, nblk) accumulator.
    i = jax.nn.sigmoid(cc[0 * Hd:1 * Hd, :])
    f = jax.nn.sigmoid(cc[1 * Hd:2 * Hd, :])
    o = jax.nn.sigmoid(cc[2 * Hd:3 * Hd, :])
    g = jnp.tanh(cc[3 * Hd:4 * Hd, :])

    c_next = f * c_ref[...] + i * g            # float32 gate math on the VPU/EUP
    h_next = o * jnp.tanh(c_next)

    c_out_ref[...] = c_next
    h_out_ref[...] = h_next.astype(h_out_ref.dtype)


def _choose_lane_block(n_lanes, per_lane_bytes, budget=_VMEM_PIPE_BUDGET):
    """Largest 128-multiple lane block under the VMEM budget (capped), split in
    two when that yields no padding so the parallel grid axis has >=2 steps."""
    n_pad128 = pl.cdiv(n_lanes, _LANE) * _LANE
    blk = max(_LANE, (min(_MAX_LANE_BLOCK, budget // per_lane_bytes) // _LANE) * _LANE)
    blk = min(blk, n_pad128)
    if blk == n_pad128 and n_pad128 % (2 * _LANE) == 0 and n_pad128 >= 2 * _LANE:
        blk = n_pad128 // 2        # >=2 grid steps so both v7x TensorCores get work
    return blk


@functools.partial(jax.jit, static_argnames=("lane_block", "use_bf16", "patch_buffers"))
def convlstm_cell_forward_cf(x_cf, h_cf, c_cf, w_hwio, bias, *,
                             lane_block=None, use_bf16=True, patch_buffers=2):
    """ConvLSTMCell.forward on channel-first tensors.

    x_cf: (Cx, B, H, W); h_cf: (Hd, B, H, W); c_cf: (Hd, B, H, W).
    Returns (h_next_cf, c_next_cf) with h in x_cf.dtype and c in float32.
    For recurrent use keep h/c in this layout (and c in f32) across timesteps
    and convert to NCHW only at the sequence boundary.
    """
    Cx, B, H, W = x_cf.shape
    Hd = h_cf.shape[0]
    K = w_hwio.shape[0]
    Cin = Cx + Hd
    assert K % 2 == 1, "padding = K//2 matches PyTorch only for odd kernel_size"
    assert Hd % 8 == 0, "hidden_dim must be a multiple of 8 (sublane tile alignment)"
    pad = K // 2

    N = B * H * W
    KKC = K * K * Cin
    # +1 all-ones row carrying the bias, rounded up to the 16-row sublane tile
    # (covers bf16 and f32 layouts); <=15 dummy rows instead of padding to 128.
    KKCp = ((KKC + 1 + 15) // 16) * 16
    out_dtype = x_cf.dtype
    mm_dtype = jnp.bfloat16 if use_bf16 else jnp.float32
    mm_bytes = jnp.dtype(mm_dtype).itemsize
    out_bytes = jnp.dtype(out_dtype).itemsize

    # --- lane-block sizing & explicit VMEM limit ------------------------------
    per_lane = 2 * (KKCp * mm_bytes + 2 * Hd * 4 + Hd * out_bytes)   # double-buffered
    nblk = lane_block if lane_block is not None else _choose_lane_block(N, per_lane)
    assert nblk % _LANE == 0, "lane_block must be a multiple of 128"
    n_pad = pl.cdiv(N, nblk) * nblk
    grid = (n_pad // nblk,)
    vmem_need = per_lane * nblk + 2 * 4 * Hd * KKCp * mm_bytes
    vmem_limit = int(min(48 * 2**20, max(32 * 2**20, 2 * vmem_need)))

    # --- weights: (K, K, Cin, 4Hd) -> (4Hd, K*K*Cin | bias | 0-pad) -----------
    w_mat = jnp.transpose(w_hwio, (3, 0, 1, 2)).reshape(4 * Hd, KKC)
    w_mat = jnp.concatenate([w_mat, bias.reshape(4 * Hd, 1)], axis=1)
    w_mat = jnp.pad(w_mat, ((0, 0), (0, KKCp - KKC - 1))).astype(mm_dtype)

    # --- im2col patches, channel-first, B*H*W folded onto the lane axis -------
    comb = jnp.concatenate([x_cf.astype(mm_dtype), h_cf.astype(mm_dtype)], axis=0)
    comb = jnp.pad(comb, ((0, 0), (0, 0), (pad, pad), (pad, pad)))
    taps = [comb[:, :, ky:ky + H, kx:kx + W]              # tap-major, matches w_mat
            for ky in range(K) for kx in range(K)]
    patches = jnp.concatenate(taps, axis=0).reshape(KKC, N)
    patches = jnp.concatenate([patches, jnp.ones((1, N), mm_dtype)], axis=0)
    patches = jnp.pad(patches, ((0, KKCp - KKC - 1), (0, n_pad - N)))

    # --- cell state, channel-first-flat, float32 (recurrent precision) --------
    c_mat = jnp.pad(c_cf.astype(jnp.float32).reshape(Hd, N), ((0, 0), (0, n_pad - N)))

    patch_spec_kwargs = {}
    if patch_buffers != 2:
        # Tuning knob: deeper pipelining on the dominant (patches) stream.
        patch_spec_kwargs["pipeline_mode"] = pl.Buffered(patch_buffers)

    h_mat, c_mat_next = pl.pallas_call(
        _convlstm_kernel,
        out_shape=(
            jax.ShapeDtypeStruct((Hd, n_pad), out_dtype),
            jax.ShapeDtypeStruct((Hd, n_pad), jnp.float32),
        ),
        grid_spec=pltpu.PrefetchScalarGridSpec(
            num_scalar_prefetch=0,
            grid=grid,
            in_specs=[
                pl.BlockSpec((KKCp, nblk), lambda n: (0, n), **patch_spec_kwargs),
                pl.BlockSpec((4 * Hd, KKCp), lambda n: (0, 0)),
                pl.BlockSpec((Hd, nblk), lambda n: (0, n)),
            ],
            out_specs=[
                pl.BlockSpec((Hd, nblk), lambda n: (0, n)),
                pl.BlockSpec((Hd, nblk), lambda n: (0, n)),
            ],
        ),
        input_output_aliases={2: 1},        # c_next written in place of c_cur
        compiler_params=pltpu.CompilerParams(
            dimension_semantics=("parallel",),
            vmem_limit_bytes=vmem_limit),
    )(patches, w_mat, c_mat)

    h_next_cf = h_mat[:, :N].reshape(Hd, B, H, W)
    c_next_cf = c_mat_next[:, :N].reshape(Hd, B, H, W)
    return h_next_cf, c_next_cf


@functools.partial(jax.jit, static_argnames=("lane_block", "use_bf16", "patch_buffers"))
def convlstm_cell_forward(x_nchw, h_nchw, c_nchw, w_hwio, bias, *,
                          lane_block=None, use_bf16=True, patch_buffers=2):
    """Matches ConvLSTMCell.forward.  Inputs/outputs in NCHW (PyTorch layout)."""
    x_cf = jnp.transpose(x_nchw, (1, 0, 2, 3))
    h_cf = jnp.transpose(h_nchw, (1, 0, 2, 3))
    c_cf = jnp.transpose(c_nchw, (1, 0, 2, 3))
    h_next_cf, c_next_cf = convlstm_cell_forward_cf(
        x_cf, h_cf, c_cf, w_hwio, bias,
        lane_block=lane_block, use_bf16=use_bf16, patch_buffers=patch_buffers)
    h_next = jnp.transpose(h_next_cf, (1, 0, 2, 3)).astype(x_nchw.dtype)
    c_next = jnp.transpose(c_next_cf, (1, 0, 2, 3)).astype(c_nchw.dtype)
    return h_next, c_next


def _reference_forward(x_nchw, h_nchw, c_nchw, w_hwio, bias):
    """Pure-JAX reference replicating the PyTorch forward (NCHW)."""
    comb = jnp.concatenate([x_nchw, h_nchw], axis=1)   # NCHW
    w_oihw = jnp.transpose(w_hwio, (3, 2, 0, 1))       # HWIO -> OIHW
    cc = lax.conv_general_dilated(
        comb, w_oihw, window_strides=(1, 1), padding="SAME",
        dimension_numbers=("NCHW", "OIHW", "NCHW"))
    cc = cc + bias.reshape(1, -1, 1, 1)
    cc_i, cc_f, cc_o, cc_g = jnp.split(cc, 4, axis=1)
    i = jax.nn.sigmoid(cc_i)
    f = jax.nn.sigmoid(cc_f)
    o = jax.nn.sigmoid(cc_o)
    g = jnp.tanh(cc_g)
    c_next = f * c_nchw + i * g
    h_next = o * jnp.tanh(c_next)
    return h_next, c_next


if __name__ == "__main__":
    batch = 2
    input_dim = 4
    hidden_dim = 8
    kernel_size = 3
    height = width = 16
    use_bias = True

    key = jax.random.PRNGKey(0)
    k_x, k_h, k_c, k_w, k_b = jax.random.split(key, 5)

    # Inputs in PyTorch NCHW layout.
    x = jax.random.normal(k_x, (batch, input_dim, height, width), jnp.float32)
    h_cur = jax.random.normal(k_h, (batch, hidden_dim, height, width), jnp.float32)
    c_cur = jax.random.normal(k_c, (batch, hidden_dim, height, width), jnp.float32)

    # Deterministic synthetic parameters (same shapes as nn.Conv2d in __init__).
    cin = input_dim + hidden_dim
    cout = 4 * hidden_dim
    fan_in = cin * kernel_size * kernel_size
    bound = 1.0 / (fan_in ** 0.5)
    w_hwio = jax.random.uniform(
        k_w, (kernel_size, kernel_size, cin, cout), jnp.float32,
        minval=-bound, maxval=bound)
    bias = (jax.random.uniform(k_b, (cout,), jnp.float32, minval=-bound, maxval=bound)
            if use_bias else jnp.zeros((cout,), jnp.float32))

    h_ref, c_ref = _reference_forward(x, h_cur, c_cur, w_hwio, bias)

    # 1) f32 matmul operands, auto lane blocking (N = 512 -> two pipelined,
    #    megacore-parallel grid steps of 256 lanes each).
    h_f32, c_f32 = convlstm_cell_forward(x, h_cur, c_cur, w_hwio, bias,
                                         use_bf16=False)
    jax.block_until_ready((h_f32, c_f32))
    assert h_f32.shape == (batch, hidden_dim, height, width)
    assert c_f32.shape == (batch, hidden_dim, height, width)
    assert jnp.allclose(h_f32, h_ref, atol=1e-5, rtol=1e-5)
    assert jnp.allclose(c_f32, c_ref, atol=1e-5, rtol=1e-5)

    # 2) default path: bf16 matmul operands (f32 MXU accumulate + f32 gate math)
    #    with explicit 128-lane blocks -> 4 pipelined grid steps.
    h_bf, c_bf = convlstm_cell_forward(x, h_cur, c_cur, w_hwio, bias,
                                       lane_block=128)
    jax.block_until_ready((h_bf, c_bf))
    assert jnp.allclose(h_bf, h_ref, atol=5e-2, rtol=5e-2)
    assert jnp.allclose(c_bf, c_ref, atol=5e-2, rtol=5e-2)

    print("KERNEL_OK")
</pallas_src>

<mosaic_0001>
module attributes {stable_mosaic.version = 11 : i64} {
  func.func @_convlstm_kernel(%arg0: i32, %arg1: memref<112x256xf32, #tpu.memory_space<vmem>>, %arg2: memref<32x112xf32, #tpu.memory_space<vmem>>, %arg3: memref<8x256xf32, #tpu.memory_space<vmem>>, %arg4: memref<8x256xf32, #tpu.memory_space<vmem>>, %arg5: memref<8x256xf32, #tpu.memory_space<vmem>>) attributes {dimension_semantics = [#tpu.dimension_semantics<parallel>], iteration_bounds = array<i64: 2>, scalar_prefetch = 0 : i64, scratch_operands = 0 : i64, tpu.core_type = #tpu.core_type<tc>, window_params = [{transform_indices = @transform_0, window_bounds = array<i64: 112, 256>}, {pipeline_mode = #tpu.pipeline_mode<synchronous>, transform_indices = @transform_1, window_bounds = array<i64: 32, 112>}, {transform_indices = @transform_2, window_bounds = array<i64: 8, 256>}, {transform_indices = @transform_3, window_bounds = array<i64: 8, 256>}, {transform_indices = @transform_4, window_bounds = array<i64: 8, 256>}]} {
    %c0 = arith.constant 0 : index
    %c0_0 = arith.constant 0 : index
    %0 = vector.load %arg2[%c0, %c0_0] : memref<32x112xf32, #tpu.memory_space<vmem>>, vector<32x112xf32>
    %c0_1 = arith.constant 0 : index
    %c0_2 = arith.constant 0 : index
    %1 = vector.load %arg1[%c0_1, %c0_2] : memref<112x256xf32, #tpu.memory_space<vmem>>, vector<112x256xf32>
    %cst = arith.constant dense<0.000000e+00> : vector<32x256xf32>
    %2 = tpu.matmul %0, %1, %cst {dimension_numbers = #tpu.dot_dimension_numbers<[1], [0], [0], [1], [0, 0, 1, 1], [], []>} : vector<32x112xf32>, vector<112x256xf32>, vector<32x256xf32> -> vector<32x256xf32>
    %3 = vector.extract_strided_slice %2 {offsets = [0, 0], sizes = [8, 256], strides = [1, 1]} : vector<32x256xf32> to vector<8x256xf32>
    %4 = arith.negf %3 : vector<8x256xf32>
    %5 = math.exp %4 : vector<8x256xf32>
    %cst_3 = arith.constant 1.000000e+00 : f32
    %6 = vector.broadcast %cst_3 : f32 to vector<8x256xf32>
    %7 = arith.addf %6, %5 : vector<8x256xf32>
    %8 = arith.divf %6, %7 : vector<8x256xf32>
    %9 = vector.extract_strided_slice %2 {offsets = [8, 0], sizes = [8, 256], strides = [1, 1]} : vector<32x256xf32> to vector<8x256xf32>
    %10 = arith.negf %9 : vector<8x256xf32>
    %11 = math.exp %10 : vector<8x256xf32>
    %cst_4 = arith.constant 1.000000e+00 : f32
    %12 = vector.broadcast %cst_4 : f32 to vector<8x256xf32>
    %13 = arith.addf %12, %11 : vector<8x256xf32>
    %14 = arith.divf %12, %13 : vector<8x256xf32>
    %15 = vector.extract_strided_slice %2 {offsets = [16, 0], sizes = [8, 256], strides = [1, 1]} : vector<32x256xf32> to vector<8x256xf32>
    %16 = arith.negf %15 : vector<8x256xf32>
    %17 = math.exp %16 : vector<8x256xf32>
    %cst_5 = arith.constant 1.000000e+00 : f32
    %18 = vector.broadcast %cst_5 : f32 to vector<8x256xf32>
    %19 = arith.addf %18, %17 : vector<8x256xf32>
    %20 = arith.divf %18, %19 : vector<8x256xf32>
    %21 = vector.extract_strided_slice %2 {offsets = [24, 0], sizes = [8, 256], strides = [1, 1]} : vector<32x256xf32> to vector<8x256xf32>
    %22 = math.tanh %21 : vector<8x256xf32>
    %c0_6 = arith.constant 0 : index
    %c0_7 = arith.constant 0 : index
    %23 = vector.load %arg3[%c0_6, %c0_7] : memref<8x256xf32, #tpu.memory_space<vmem>>, vector<8x256xf32>
    %24 = arith.mulf %14, %23 : vector<8x256xf32>
    %25 = arith.mulf %8, %22 : vector<8x256xf32>
    %26 = arith.addf %24, %25 : vector<8x256xf32>
    %27 = math.tanh %26 : vector<8x256xf32>
    %28 = arith.mulf %20, %27 : vector<8x256xf32>
    %c0_8 = arith.constant 0 : index
    %c0_9 = arith.constant 0 : index
    %29 = vector.load %arg5[%c0_8, %c0_9] : memref<8x256xf32, #tpu.memory_space<vmem>>, vector<8x256xf32>
    tpu.vector_store %arg5[%c0_8, %c0_9], %26 {strides = array<i32>} : memref<8x256xf32, #tpu.memory_space<vmem>>, vector<8x256xf32>,
    %c0_10 = arith.constant 0 : index
    %c0_11 = arith.constant 0 : index
    %30 = vector.load %arg4[%c0_10, %c0_11] : memref<8x256xf32, #tpu.memory_space<vmem>>, vector<8x256xf32>
    tpu.vector_store %arg4[%c0_10, %c0_11], %28 {strides = array<i32>} : memref<8x256xf32, #tpu.memory_space<vmem>>, vector<8x256xf32>,
    return
  }
  func.func @transform_0(%arg0: i32) -> (i32, i32) {
    %c0_i32 = arith.constant 0 : i32
    %c0_i32_0 = arith.constant 0 : i32
    return %c0_i32, %arg0 : i32, i32
  }
  func.func @transform_1(%arg0: i32) -> (i32, i32) {
    %c0_i32 = arith.constant 0 : i32
    %c0_i32_0 = arith.constant 0 : i32
    %c0_i32_1 = arith.constant 0 : i32
    return %c0_i32, %c0_i32_0 : i32, i32
  }
  func.func @transform_2(%arg0: i32) -> (i32, i32) {
    %c0_i32 = arith.constant 0 : i32
    %c0_i32_0 = arith.constant 0 : i32
    return %c0_i32, %arg0 : i32, i32
  }
  func.func @transform_3(%arg0: i32) -> (i32, i32) {
    %c0_i32 = arith.constant 0 : i32
    %c0_i32_0 = arith.constant 0 : i32
    return %c0_i32, %arg0 : i32, i32
  }
  func.func @transform_4(%arg0: i32) -> (i32, i32) {
    %c0_i32 = arith.constant 0 : i32
    %c0_i32_0 = arith.constant 0 : i32
    return %c0_i32, %arg0 : i32, i32
  }
}

</mosaic_0001>

<bundles_post_ra>
// kernel: convlstm_cell_forward_cf.1
= control target key start
LH: loop header
LB: loop body
LE: loop exit
PB: predicated region body
PF: predicated region fallthrough
CT: control target
= control target key end

     0   :  { %s783_s15 = smov 0   ;;  %s785_s16 = smov 0   ;;  %s952_s0 = inlined_call_operand.vmem [shape: f32[112,512], index: 0, kind: input, shape index: {}]   ;;  %s953_s1 = inlined_call_operand.vmem [shape: f32[32,112], index: 1, kind: input, shape index: {}]   ;;  %s954_s2 = inlined_call_operand.vmem [shape: f32[8,512], index: 2, kind: input, shape index: {}, may-alias: {2,4}]   ;;  %s955_s3 = inlined_call_operand.vmem [shape: f32[8,512], index: 3, kind: output, shape index: {0}]   ;;  %s956_s4 = inlined_call_operand.vmem [shape: f32[8,512], index: 4, kind: output, shape index: {1}, may-alias: {2,4}]  }
   0x1   :  { %s787_s17 = smov 0  }
   0x2 LB: > { %s606_s18 = sadd.s32 4294967295, %s755_s17   ;;  %s800_s19 = sadd.s32 1, %s755_s17   ;;  %s755_s17 = sphi %s787_s17, %s959_s17   ;;  %s751_s16 = sphi %s785_s16, %s958_s16   ;;  %s747_s15 = sphi %s783_s15, %s957_s15  }
   0x3   : > { %s19_s20 = ssub.s32 %s755_s17, %s800_s19  ;;  %s22_s21 = sadd.s32 1, %s751_s16 }
   0x4   : > { %p20_p0 = scmp.eq.s32.totalorder %s19_s20, 0  ;;  %p29_p1 = scmp.ne.s32.totalorder %s751_s16, %s747_s15 }
   0x5   : > { %p30_p2 = scmp.eq.s32.totalorder %s755_s17, 0  ;;  %p609_p4 = scmp.ge.s32.totalorder %s755_s17, 2 }
   0x6   : > { %s809_s22 = scalar_select %p20_p0, %s751_s16, %s22_s21  }
   0x7   : > { %p31_p3 = por %p30_p2, %p29_p1  ;;  %157 = sbr.rel (%p609_p4) target bundleno = 32 (0x20), region = 20 }
   0xe   : > { %160 = sbr.rel (!%p31_p3) target bundleno = 32 (0x20), region = 24  ;;  %s162_s23 = sand.u32 (%p31_p3), 1, %s751_s16  }
   0xf   : > { %s631_s24 = sshll.u32 (%p31_p3), %s755_s17, 4  ;;  %s674_s25 = smul.u32 (%p31_p3), 224, %s162_s23 }
  0x10   : > { %s817_s28 = scalar_lea.vmem (%p31_p3), %s952_s0, %s631_s24 }
  0x11   : > { %v180_v0 = vld [vmem:[%s817_s28] sm:$0xff] (%p31_p3)  ;;  %v182_v1 = vld [vmem:[%s817_s28 + $0x8] sm:$0xff] (%p31_p3)  ;;  %s825_s29 = scalar_lea.vmem (%p31_p3), [#allocation2], %s674_s25 }
  0x12   : > { %v184_v2 = vld [vmem:[%s817_s28 + $0x20] sm:$0xff] (%p31_p3)  ;;  %v186_v3 = vld [vmem:[%s817_s28 + $0x28] sm:$0xff] (%p31_p3)  ;;  %181 = vst [vmem:[%s825_s29] sm:$0xff] (%p31_p3), %v180_v0  ;;  %183 = vst [vmem:[%s825_s29 + $0x8] sm:$0xff] (%p31_p3), %v182_v1 }
  0x13   : > { %v188_v4 = vld [vmem:[%s817_s28 + $0x40] sm:$0xff] (%p31_p3)  ;;  %v190_v5 = vld [vmem:[%s817_s28 + $0x48] sm:$0xff] (%p31_p3)  ;;  %185 = vst [vmem:[%s825_s29 + $0x10] sm:$0xff] (%p31_p3), %v184_v2  ;;  %187 = vst [vmem:[%s825_s29 + $0x18] sm:$0xff] (%p31_p3), %v186_v3 }
  0x14   : > { %189 = vst [vmem:[%s825_s29 + $0x20] sm:$0xff] (%p31_p3), %v188_v4  ;;  %191 = vst [vmem:[%s825_s29 + $0x28] sm:$0xff] (%p31_p3), %v190_v5  ;;  %v192_v6 = vld [vmem:[%s817_s28 + $0x60] sm:$0xff] (%p31_p3)  ;;  %v194_v7 = vld [vmem:[%s817_s28 + $0x68] sm:$0xff] (%p31_p3) }
  0x15   : > { %v196_v8 = vld [vmem:[%s817_s28 + $0x80] sm:$0xff]  ;;  %193 = vst [vmem:[%s825_s29 + $0x30] sm:$0xff] %v192_v6  ;;  %195 = vst [vmem:[%s825_s29 + $0x38] sm:$0xff] %v194_v7  ;;  %v198_v9 = vld [vmem:[%s817_s28 + $0x88] sm:$0xff] }
  0x16   : > { %197 = vst [vmem:[%s825_s29 + $0x40] sm:$0xff] %v196_v8  ;;  %v200_v10 = vld [vmem:[%s817_s28 + $0xa0] sm:$0xff]  ;;  %v202_v11 = vld [vmem:[%s817_s28 + $0xa8] sm:$0xff]  ;;  %199 = vst [vmem:[%s825_s29 + $0x48] sm:$0xff] %v198_v9 }
  0x17   : > { %201 = vst [vmem:[%s825_s29 + $0x50] sm:$0xff] %v200_v10  ;;  %203 = vst [vmem:[%s825_s29 + $0x58] sm:$0xff] %v202_v11  ;;  %v204_v12 = vld [vmem:[%s817_s28 + $0xc0] sm:$0xff]  ;;  %v206_v13 = vld [vmem:[%s817_s28 + $0xc8] sm:$0xff] }
  0x18   : > { %v208_v14 = vld [vmem:[%s817_s28 + $0xe0] sm:$0xff]  ;;  %205 = vst [vmem:[%s825_s29 + $0x60] sm:$0xff] %v204_v12  ;;  %207 = vst [vmem:[%s825_s29 + $0x68] sm:$0xff] %v206_v13  ;;  %v210_v15 = vld [vmem:[%s817_s28 + $0xe8] sm:$0xff] }
  0x19   : > { %209 = vst [vmem:[%s825_s29 + $0x70] sm:$0xff] %v208_v14  ;;  %v212_v16 = vld [vmem:[%s817_s28 + $0x100] sm:$0xff]  ;;  %v214_v17 = vld [vmem:[%s817_s28 + $0x108] sm:$0xff]  ;;  %211 = vst [vmem:[%s825_s29 + $0x78] sm:$0xff] %v210_v15 }
  0x1a   : > { %213 = vst [vmem:[%s825_s29 + $0x80] sm:$0xff] %v212_v16  ;;  %215 = vst [vmem:[%s825_s29 + $0x88] sm:$0xff] %v214_v17  ;;  %v216_v18 = vld [vmem:[%s817_s28 + $0x120] sm:$0xff]  ;;  %v218_v19 = vld [vmem:[%s817_s28 + $0x128] sm:$0xff] }
  0x1b   : > { %v220_v20 = vld [vmem:[%s817_s28 + $0x140] sm:$0xff]  ;;  %217 = vst [vmem:[%s825_s29 + $0x90] sm:$0xff] %v216_v18  ;;  %219 = vst [vmem:[%s825_s29 + $0x98] sm:$0xff] %v218_v19  ;;  %v222_v21 = vld [vmem:[%s817_s28 + $0x148] sm:$0xff] }
  0x1c   : > { %221 = vst [vmem:[%s825_s29 + $0xa0] sm:$0xff] %v220_v20  ;;  %v224_v22 = vld [vmem:[%s817_s28 + $0x160] sm:$0xff]  ;;  %v226_v23 = vld [vmem:[%s817_s28 + $0x168] sm:$0xff]  ;;  %223 = vst [vmem:[%s825_s29 + $0xa8] sm:$0xff] %v222_v21 }
  0x1d   : > { %225 = vst [vmem:[%s825_s29 + $0xb0] sm:$0xff] %v224_v22  ;;  %227 = vst [vmem:[%s825_s29 + $0xb8] sm:$0xff] %v226_v23  ;;  %v228_v24 = vld [vmem:[%s817_s28 + $0x180] sm:$0xff]  ;;  %v230_v25 = vld [vmem:[%s817_s28 + $0x188] sm:$0xff] }
  0x1e   : > { %v232_v26 = vld [vmem:[%s817_s28 + $0x1a0] sm:$0xff]  ;;  %229 = vst [vmem:[%s825_s29 + $0xc0] sm:$0xff] %v228_v24  ;;  %231 = vst [vmem:[%s825_s29 + $0xc8] sm:$0xff] %v230_v25  ;;  %v234_v27 = vld [vmem:[%s817_s28 + $0x1a8] sm:$0xff] }
  0x1f   : > { %233 = vst [vmem:[%s825_s29 + $0xd0] sm:$0xff] %v232_v26  ;;  %235 = vst [vmem:[%s825_s29 + $0xd8] sm:$0xff] %v234_v27 }
  0x20 PF: > { %p612_p5 = scmp.ge.s32.totalorder %s755_s17, 1  ;;  %p249_p6 = scmp.lt.s32.totalorder %s755_s17, 3 }
  0x22   : > { %p250_p7 = pnand %p612_p5, %p249_p6 }
  0x23   : > { %s256_s30 = sand.u32 (!%p250_p7), 1, %s747_s15   ;;  %v757_v28 = vmov (!%p250_p7), 0.0   ;;  %v310_v7 = vld [vmem:[%s953_s1] sm:$0xff] (!%p250_p7)  ;;  %vm342_vm0 = vcmask (!%p250_p7), 916480   ;;  %v312_v8 = vld [vmem:[%s953_s1 + $0x10] sm:$0xff] (!%p250_p7)  ;;  %v311_v9 = vld [vmem:[%s953_s1 + $0x8] sm:$0xff] (!%p250_p7) }
  0x24   : > { %253 = sbr.rel (%p250_p7) target bundleno = 332 (0x14c), region = 51  ;;  %419 = vmatprep.mubr.f32.mxu0 (!%p250_p7), %v757_v28  ;;  %431 = vmatprep.mubr.f32.mxu1 (!%p250_p7), %v757_v28  ;;  %v313_v10 = vld [vmem:[%s953_s1 + $0x18] sm:$0xff] (!%p250_p7)  ;;  %s613_s15 = sshll.u32 (!%p250_p7), %s606_s18, 1 }
  0x25   : > { %s675_s5 = smul.u32 (!%p250_p7), 224, %s256_s30  ;;  %p293_p8 = scmp.lt.s32.totalorder (!%p250_p7), %s613_s15, 3 }
  0x27   : > { %s882_s6 = scalar_lea.vmem (!%p250_p7), [#allocation2], %s675_s5 }
  0x28   : > { %v315_v29 = vld [vmem:[%s882_s6 + $0x8] sm:$0xff] (!%p250_p7)  ;;  %v317_v30 = vld [vmem:[%s882_s6 + $0x18] sm:$0xff] (!%p250_p7)  ;;  %v314_v31 = vld [vmem:[%s882_s6] sm:$0xff] (!%p250_p7) }
  0x29   : > { %v632_v32 = vpack.c.bf16 (!%p250_p7), %v317_v30, %v315_v29  ;;  %v316_v33 = vld [vmem:[%s882_s6 + $0x10] sm:$0xff] (!%p250_p7)  ;;  %v319_v34 = vld [vmem:[%s882_s6 + $0x28] sm:$0xff] (!%p250_p7)  ;;  %v321_v35 = vld [vmem:[%s882_s6 + $0x38] sm:$0xff] (!%p250_p7) }
  0x2a   : > { %v634_v36 = vpack.c.bf16 (!%p250_p7), %v316_v33, %v314_v31  ;;  %v636_v37 = vpack.c.bf16 (!%p250_p7), %v321_v35, %v319_v34  ;;  %v318_v38 = vld [vmem:[%s882_s6 + $0x20] sm:$0xff] (!%p250_p7)  ;;  %v320_v39 = vld [vmem:[%s882_s6 + $0x30] sm:$0xff] (!%p250_p7)  ;;  %v323_v40 = vld [vmem:[%s882_s6 + $0x48] sm:$0xff] (!%p250_p7) }
  0x2b   : > { %633 = vmatprep.subr.bf16.mxu0 %v632_v32  ;;  %v325_v41 = vld [vmem:[%s882_s6 + $0x58] sm:$0xff]  ;;  %660 = vmatprep.subr.bf16.mxu1 %v632_v32  ;;  %v638_v42 = vpack.c.bf16 %v320_v39, %v318_v38  ;;  %v322_v44 = vld [vmem:[%s882_s6 + $0x40] sm:$0xff]  ;;  %v324_v45 = vld [vmem:[%s882_s6 + $0x50] sm:$0xff]  ;;  %s961_s15 = smov (!%p293_p8, %s613_s15), 3 }
  0x2c   : > { %635 = vmatpush1.bf16.msra.mxu0 %v634_v36  ;;  %667 = vmatpush1.bf16.msra.mxu1 %v634_v36  ;;  %v640_v43 = vpack.c.bf16 %v325_v41, %v323_v40  ;;  %v327_v46 = vld [vmem:[%s882_s6 + $0x68] sm:$0xff]  ;;  %v329_v47 = vld [vmem:[%s882_s6 + $0x78] sm:$0xff]  ;;  %v642_v48 = vpack.c.bf16 %v324_v45, %v322_v44  ;;  %v326_v50 = vld [vmem:[%s882_s6 + $0x60] sm:$0xff]  ;;  %s928_s17 = sshll.u32 %s961_s15, 3 }
  0x2d   : > { %637 = vmatprep.subr.bf16.mxu0 %v636_v37  ;;  %661 = vmatprep.subr.bf16.mxu1 %v636_v37  ;;  %v644_v49 = vpack.c.bf16 %v329_v47, %v327_v46  ;;  %v328_v51 = vld [vmem:[%s882_s6 + $0x70] sm:$0xff]  ;;  %v331_v52 = vld [vmem:[%s882_s6 + $0x88] sm:$0xff]  ;;  %v333_v53 = vld [vmem:[%s882_s6 + $0x98] sm:$0xff]  ;;  %s296_s21 = scalar_lea.vmem %s954_s2, %s928_s17  ;;  %s308_s25 = scalar_lea.vmem %s956_s4, %s928_s17 }
  0x2e   : > { %v646_v54 = vpack.c.bf16 %v328_v51, %v326_v50  ;;  %v648_v55 = vpack.c.bf16 %v333_v53, %v331_v52  ;;  %v330_v56 = vld [vmem:[%s882_s6 + $0x80] sm:$0xff]  ;;  %v332_v57 = vld [vmem:[%s882_s6 + $0x90] sm:$0xff]  ;;  %v335_v58 = vld [vmem:[%s882_s6 + $0xa8] sm:$0xff]  ;;  %s302_s28 = scalar_lea.vmem %s955_s3, %s928_s17 }
  0x2f   : > { %v337_v59 = vld [vmem:[%s882_s6 + $0xb8] sm:$0xff]  ;;  %v650_v60 = vpack.c.bf16 %v332_v57, %v330_v56  ;;  %v334_v62 = vld [vmem:[%s882_s6 + $0xa0] sm:$0xff]  ;;  %v336_v63 = vld [vmem:[%s882_s6 + $0xb0] sm:$0xff] }
  0x30   : > { %639 = vmatpush1.bf16.msra.mxu0 %v638_v42  ;;  %668 = vmatpush1.bf16.msra.mxu1 %v638_v42  ;;  %v652_v61 = vpack.c.bf16 %v337_v59, %v335_v58  ;;  %v339_v0 = vld [vmem:[%s882_s6 + $0xc8] sm:$0xff]  ;;  %v341_v1 = vld [vmem:[%s882_s6 + $0xd8] sm:$0xff]  ;;  %v654_v2 = vpack.c.bf16 %v336_v63, %v334_v62  ;;  %v338_v4 = vld [vmem:[%s882_s6 + $0xc0] sm:$0xff] }
  0x31   : > { %641 = vmatprep.subr.bf16.mxu0 %v640_v43  ;;  %662 = vmatprep.subr.bf16.mxu1 %v640_v43  ;;  %v656_v3 = vpack.c.bf16 %v341_v1, %v339_v0  ;;  %v340_v5 = vld [vmem:[%s882_s6 + $0xd0] sm:$0xff]  ;;  %v482_v40 = vld [vmem:[%s296_s21] sm:$0xff]  ;;  %v483_v42 = vld [vmem:[%s296_s21 + $0x8] sm:$0xff] }
  0x32   : > { %v658_v6 = vpack.c.bf16 %v340_v5, %v338_v4 }
  0x34   : > { %643 = vmatpush1.bf16.msra.mxu0 %v642_v48  ;;  %669 = vmatpush1.bf16.msra.mxu1 %v642_v48 }
  0x35   : > { %645 = vmatprep.subr.bf16.mxu0 %v644_v49  ;;  %663 = vmatprep.subr.bf16.mxu1 %v644_v49 }
  0x38   : > { %647 = vmatpush1.bf16.msra.mxu0 %v646_v54  ;;  %670 = vmatpush1.bf16.msra.mxu1 %v646_v54 }
  0x39   : > { %649 = vmatprep.subr.bf16.mxu0 %v648_v55  ;;  %664 = vmatprep.subr.bf16.mxu1 %v648_v55 }
  0x3c   : > { %651 = vmatpush1.bf16.msra.mxu0 %v650_v60  ;;  %671 = vmatpush1.bf16.msra.mxu1 %v650_v60 }
  0x3d   : > { %653 = vmatprep.subr.bf16.mxu0 %v652_v61  ;;  %665 = vmatprep.subr.bf16.mxu1 %v652_v61 }
  0x40   : > { %655 = vmatpush1.bf16.msra.mxu0 %v654_v2  ;;  %672 = vmatpush1.bf16.msra.mxu1 %v654_v2 }
  0x41   : > { %657 = vmatprep.subr.bf16.mxu0 %v656_v3  ;;  %666 = vmatprep.subr.bf16.mxu1 %v656_v3 }
  0x44   : > { %659 = vmatpush1.bf16.msra.mxu0 %v658_v6  ;;  %673 = vmatpush1.bf16.msra.mxu1 %v658_v6 }
  0x47   : > { %619 = vmatmul.mubr.msk.f32.vlgmr.msra.gmra.mrb[0].mxu0 %vm342_vm0, %v310_v7  ;;  %621 = vmatmul.mubr.msk.f32.vlgmr.msra.gmra.mrb[0].mxu1 %vm342_vm0, %v312_v8 }
  0x48   : > { %425 = vmatprep.mubr.f32.mxu0 %v757_v28  ;;  %437 = vmatprep.mubr.f32.mxu1 %v757_v28 }
  0x4b   : > { %620 = vmatmul.mubr.msk.f32.gmra.mrb[2].mxu0 %vm342_vm0, %v311_v9  ;;  %622 = vmatmul.mubr.msk.f32.gmra.mrb[2].mxu1 %vm342_vm0, %v313_v10 }
 0x11a   : > { %v421_v11 = vpop.f32.mrb[0].mxu0  ;;  %v433_v12 = vpop.f32.mrb[0].mxu1 }
 0x11b   : > { %v623_v13 = vmul.f32 -1.442695, %v421_v11  ;;  %v423_v14 = vpop.f32.mrb[1].mxu0  ;;  %v435_v15 = vpop.f32.mrb[1].mxu1  ;;  %v627_v23 = vmul.f32 -1.442695, %v433_v12 }
 0x11c   : > { %v624_v16 = vmul.f32 -1.442695, %v423_v14  ;;  %v628_v24 = vmul.f32 -1.442695, %v435_v15 }
 0x11d   : > { %701 = vpow2.f32 %v623_v13 }
 0x11e   : > { %703 = vpow2.f32 %v624_v16  ;;  %v427_v17 = vpop.f32.mrb[2].mxu0  ;;  %v439_v18 = vpop.f32.mrb[2].mxu1 }
 0x11f   : > { %v625_v19 = vmul.f32 -1.442695, %v427_v17  ;;  %v429_v20 = vpop.f32.mrb[3].mxu0  ;;  %v441_v21 = vpop.f32.mrb[3].mxu1 }
 0x120   : > { %v626_v22 = vmul.f32 -1.442695, %v429_v20 }
 0x121   : > { %705 = vpow2.f32 %v625_v19 }
 0x122   : > { %707 = vpow2.f32 %v626_v22 }
 0x123   : > { %709 = vpow2.f32 %v627_v23 }
 0x124   : > { %711 = vpow2.f32 %v628_v24 }
 0x125   : > { %713 = vtanh.f32 %v439_v18 }
 0x126   : > { %715 = vtanh.f32 %v441_v21 }
 0x127   : > { %v702_v25 = vpop.eup %701 }
 0x128   : > { %v704_v26 = vpop.eup %703  ;;  %v450_v27 = vadd.f32 1.0, %v702_v25 }
 0x129   : > { %v451_v28 = vadd.f32 1.0, %v704_v26 }
 0x12a   : > { %717 = vrcp.f32 %v450_v27 }
 0x12b   : > { %v706_v29 = vpop.eup %705  ;;  %719 = vrcp.f32 %v451_v28 }
 0x12c   : > { %v708_v30 = vpop.eup %707  ;;  %v462_v31 = vadd.f32 1.0, %v706_v29 }
 0x12d   : > { %v463_v32 = vadd.f32 1.0, %v708_v30  ;;  %v710_v33 = vpop.eup %709 }
 0x12e   : > { %721 = vrcp.f32 %v462_v31  ;;  %v712_v34 = vpop.eup %711  ;;  %v474_v43 = vadd.f32 1.0, %v710_v33 }
 0x12f   : > { %723 = vrcp.f32 %v463_v32  ;;  %v714_v35 = vpop.eup %713  ;;  %v475_v45 = vadd.f32 1.0, %v712_v34 }
 0x130   : > { %v716_v36 = vpop.eup %715  ;;  %725 = vrcp.f32 %v474_v43 }
 0x131   : > { %727 = vrcp.f32 %v475_v45 }
 0x134   : > { %v718_v37 = vpop.eup %717 }
 0x135   : > { %v720_v38 = vpop.eup %719  ;;  %v486_v39 = vmul.f32 %v718_v37, %v714_v35 }
 0x136   : > { %v487_v41 = vmul.f32 %v720_v38, %v716_v36 }
 0x138   : > { %v722_v44 = vpop.eup %721 }
 0x139   : > { %v724_v46 = vpop.eup %723  ;;  %v484_v47 = vmul.f32 %v722_v44, %v482_v40 }
 0x13a   : > { %v485_v48 = vmul.f32 %v724_v46, %v483_v42  ;;  %v726_v51 = vpop.eup %725 }
 0x13b   : > { %v488_v49 = vadd.f32 %v486_v39, %v484_v47  ;;  %v728_v52 = vpop.eup %727 }
 0x13c   : > { %v489_v50 = vadd.f32 %v487_v41, %v485_v48 }
 0x13d   : > { %729 = vtanh.f32 %v488_v49  ;;  %494 = vst [vmem:[%s308_s25] sm:$0xff] %v488_v49 }
 0x13e   : > { %731 = vtanh.f32 %v489_v50  ;;  %495 = vst [vmem:[%s308_s25 + $0x8] sm:$0xff] %v489_v50 }
 0x147   : > { %v730_v53 = vpop.eup %729 }
 0x148   : > { %v732_v54 = vpop.eup %731  ;;  %v492_v55 = vmul.f32 %v730_v53, %v726_v51 }
 0x149   : > { %v493_v56 = vmul.f32 %v732_v54, %v728_v52 }
 0x14a   : > { %496 = vst [vmem:[%s302_s28] sm:$0xff] %v492_v55 }
 0x14b   : > { %497 = vst [vmem:[%s302_s28 + $0x8] sm:$0xff] %v493_v56 }
 0x14c PF: > { %p12_p9 = scmp.ge.s32.totalorder %s800_s19, 4   ;;  %s957_s15 = smov %s751_s16 }
 0x14d   : > { %s958_s16 = smov %s809_s22  ;;  %s959_s17 = smov %s800_s19 }
 0x14e   :  { %14 = sbr.rel (!%p12_p9) target bundleno = 2 (0x2), region = 105 }

</bundles_post_ra>
